<compile_context>
chip_gen: v5e
topology: v5e:2x2
jax: 0.10.0
libtpu: 0.0.40
codegen_flags: <defaults>
</compile_context>

<pallas_src>
import math

import jax
import jax.numpy as jnp
from jax.experimental import pallas as pl
from jax.experimental.pallas import tpu as pltpu


# --------------------------------------------------------------------------- #
# helpers
# --------------------------------------------------------------------------- #

def _round_up(a, b):
    return (a + b - 1) // b * b


def _cdiv(a, b):
    return (a + b - 1) // b


def _vmem_budget_bytes():
    """Generation-aware VMEM budget: leave ~half of physical VMEM per core for
    compiler scratch, spilled intermediates and pipelining slack."""
    cap = None
    try:
        info = pltpu.get_tpu_info()
        cap = getattr(info, "vmem_capacity_bytes", None)
    except Exception:
        cap = None
    if not cap:
        return 32 * 2**20
    # v7x: 64 MiB/TC -> 32 MiB budget.  v5e/v6e: 128 MiB -> 64 MiB budget.
    return int(min(cap // 2, 64 * 2**20))


def _pick_tile_m(m, max_tile):
    """Choose a row-tile (multiple of 8) that
       (a) gives >= 2 grid steps when possible (v7x megacore sharding),
       (b) keeps pad waste small (< ~1/8 of the rows),
       (c) is as large as possible (fewer per-step overheads)."""
    m8 = _round_up(max(m, 1), 8)
    if m8 <= 8:
        return 8

    candidates = set()
    t = 8
    while t <= max_tile:
        candidates.add(t)
        t *= 2
    # tiles that split the rows into ~2..4 near-equal pieces (low pad waste)
    for k in (2, 3, 4):
        candidates.add(min(max_tile, _round_up(_cdiv(m8, k), 8)))

    best_t, best_key = 8, None
    for t in sorted(candidates):
        if t < 8 or t > max_tile:
            continue
        steps = _cdiv(m8, t)
        pad = steps * t - m8
        waste_ok = pad * 8 <= m8            # pad waste < 1/8 of the rows
        key = (0 if steps >= 2 else 1, 0 if waste_ok else 1, -t, pad)
        if best_key is None or key < best_key:
            best_key, best_t = key, t
    return best_t


def _vmem_need_bytes(tile_m, in_dim, hid_p, out_p, dbytes):
    io = tile_m * (in_dim + out_p) * dbytes                       # x + out tile
    w = (in_dim * hid_p + hid_p * out_p) * dbytes + (hid_p + out_p) * 4
    h = tile_m * hid_p * 4                                        # f32 intermediate slab
    return 2 * io + 2 * w + h                                     # conservative (dbl-buffer)


# --------------------------------------------------------------------------- #
# kernel
# --------------------------------------------------------------------------- #

def decoder_prenet_kernel(x_ref, w1_ref, b1_ref, w2_ref, b2_ref, o_ref):
    """Fused linear -> (dropout = identity) -> linear for one row tile.

    x_ref : [TILE_M, in_dim]     compute dtype (VMEM, pipelined)
    w1_ref: [in_dim, hid_p]      compute dtype (VMEM, resident)
    b1_ref: [1, hid_p]           f32           (VMEM, resident)
    w2_ref: [hid_p, out_p]       compute dtype (VMEM, resident)
    b2_ref: [1, out_p]           f32           (VMEM, resident)
    o_ref : [TILE_M, out_p]      (VMEM, pipelined, lane-dense)
    """
    x = x_ref[...]
    prec = (jax.lax.Precision.HIGHEST if x.dtype == jnp.float32
            else jax.lax.Precision.DEFAULT)

    # Linear 1 on the MXU with f32 accumulation, bias add on the VPU.
    h = jnp.dot(x, w1_ref[...], precision=prec,
                preferred_element_type=jnp.float32) + b1_ref[...]

    # TODO(synk): nn.Dropout(p=0.1) is identity in eval mode; training-mode
    # stochastic dropout would use pltpu.prng_seed + pltpu.prng_random_bits.

    # Feed the second matmul in the compute dtype (bf16 MXU throughput when the
    # model runs bf16); accumulate in f32.
    h = h.astype(x.dtype)
    y = jnp.dot(h, w2_ref[...], precision=prec,
                preferred_element_type=jnp.float32) + b2_ref[...]

    o_ref[...] = y.astype(o_ref.dtype)


# --------------------------------------------------------------------------- #
# parameter prep (one-time, hoisted out of the hot path)
# --------------------------------------------------------------------------- #

def prepare_decoder_prenet_params(w1, b1, w2, b2, compute_dtype=jnp.float32):
    """Pad weights/biases to lane-dense shapes once, at parameter-load time.

    w1: [in_dim, hid], b1: [hid], w2: [hid, out_dim], b2: [out_dim]
    (weights already in [in, out] layout).
    """
    in_dim, hid = w1.shape
    out_dim = w2.shape[1]
    hid_p = _round_up(max(hid, 1), 128)
    out_p = _round_up(max(out_dim, 1), 128)

    w1_p = jnp.zeros((in_dim, hid_p), dtype=compute_dtype).at[:, :hid].set(
        w1.astype(compute_dtype))
    b1_p = jnp.zeros((1, hid_p), dtype=jnp.float32).at[:, :hid].set(
        b1.astype(jnp.float32).reshape(1, hid))
    w2_p = jnp.zeros((hid_p, out_p), dtype=compute_dtype).at[:hid, :out_dim].set(
        w2.astype(compute_dtype))
    b2_p = jnp.zeros((1, out_p), dtype=jnp.float32).at[:, :out_dim].set(
        b2.astype(jnp.float32).reshape(1, out_dim))

    return {
        "w1": w1_p, "b1": b1_p, "w2": w2_p, "b2": b2_p,
        "in_dim": in_dim, "hid": hid, "out_dim": out_dim,
        "hid_p": hid_p, "out_p": out_p, "compute_dtype": compute_dtype,
    }


# --------------------------------------------------------------------------- #
# wrapper
# --------------------------------------------------------------------------- #

def decoder_prenet_apply(x, params, *, tile_m=None):
    """x: [batch, seq, in_dim] -> [batch, seq, out_dim] using prepared params."""
    batch, seq, in_dim = x.shape
    assert in_dim == params["in_dim"]
    hid, out_dim = params["hid"], params["out_dim"]
    hid_p, out_p = params["hid_p"], params["out_p"]
    cdtype = params["compute_dtype"]
    dbytes = jnp.dtype(cdtype).itemsize
    w1_p, b1_p, w2_p, b2_p = params["w1"], params["b1"], params["w2"], params["b2"]

    m = batch * seq

    # ---- generation-aware tiling / VMEM budget ------------------------------
    budget = _vmem_budget_bytes()
    max_tile = tile_m if tile_m is not None else (1024 if budget >= 64 * 2**20 else 512)
    tile_m_eff = _pick_tile_m(m, max_tile)
    while tile_m_eff > 8 and _vmem_need_bytes(tile_m_eff, in_dim, hid_p, out_p,
                                              dbytes) > budget:
        tile_m_eff = max(8, _round_up(tile_m_eff // 2, 8))
    need = _vmem_need_bytes(tile_m_eff, in_dim, hid_p, out_p, dbytes)
    vmem_limit = int(min(budget, max(need + (2 << 20), 16 << 20)))

    grid_steps = _cdiv(_round_up(m, 8), tile_m_eff)
    m_pad = grid_steps * tile_m_eff

    x2d = x.reshape(m, in_dim).astype(cdtype)
    if m_pad != m:
        x2d = jnp.pad(x2d, ((0, m_pad - m), (0, 0)))
    grid = (grid_steps,)

    w_bytes = (in_dim * hid_p + hid_p * out_p) * dbytes + (hid_p + out_p) * 4
    cost = pl.CostEstimate(
        flops=2 * m_pad * (in_dim * hid_p + hid_p * out_p),
        transcendentals=0,
        bytes_accessed=m_pad * (in_dim + out_p) * dbytes + w_bytes,
    )

    def _in_specs(single_buffer_weights):
        def resident(shape):
            if single_buffer_weights:
                return pl.BlockSpec(shape, lambda i: (0, 0),
                                    pipeline_mode=pl.Buffered(1))
            return pl.BlockSpec(shape, lambda i: (0, 0))
        return [
            pl.BlockSpec((tile_m_eff, in_dim), lambda i: (i, 0)),   # x tile (pipelined)
            resident((in_dim, hid_p)),                              # w1 resident
            resident((1, hid_p)),                                   # b1 resident
            resident((hid_p, out_p)),                               # w2 resident
            resident((1, out_p)),                                   # b2 resident
        ]

    def _call(single_buffer_weights):
        return pl.pallas_call(
            decoder_prenet_kernel,
            out_shape=jax.ShapeDtypeStruct((m_pad, out_p), cdtype),
            grid=grid,
            in_specs=_in_specs(single_buffer_weights),
            out_specs=pl.BlockSpec((tile_m_eff, out_p), lambda i: (i, 0)),
            compiler_params=pltpu.CompilerParams(
                dimension_semantics=("parallel",),
                vmem_limit_bytes=vmem_limit,
            ),
            cost_estimate=cost,
        )(x2d, w1_p, b1_p, w2_p, b2_p)

    try:
        out2d = _call(True)          # single-buffered resident weights
    except Exception:
        out2d = _call(False)         # fallback: default (double-buffered) specs

    return out2d[:m, :out_dim].reshape(batch, seq, out_dim)


def decoder_prenet(x, w1, b1, w2, b2, *, tile_m=None, compute_dtype=None):
    """Convenience one-shot entry point (pads params per call).
    For repeated use, call prepare_decoder_prenet_params() once instead."""
    cdtype = compute_dtype if compute_dtype is not None else x.dtype
    params = prepare_decoder_prenet_params(w1, b1, w2, b2, compute_dtype=cdtype)
    return decoder_prenet_apply(x, params, tile_m=tile_m)


# ------------------------- init helpers (match PyTorch) ----------------------

def xavier_uniform(key, fan_in, fan_out, gain=1.0, dtype=jnp.float32):
    """Matches torch.nn.init.xavier_uniform_ for a (out, in) Linear weight;
    returned already transposed to (in, out)."""
    bound = gain * math.sqrt(6.0 / (fan_in + fan_out))
    w = jax.random.uniform(key, (fan_out, fan_in), dtype=dtype,
                           minval=-bound, maxval=bound)
    return w.T


def torch_linear_bias(key, fan_in, fan_out, dtype=jnp.float32):
    """Matches torch.nn.Linear default bias init: U(-1/sqrt(fan_in), +)."""
    bound = 1.0 / math.sqrt(fan_in)
    return jax.random.uniform(key, (fan_out,), dtype=dtype,
                              minval=-bound, maxval=bound)


if __name__ == "__main__":
    # Small shapes consistent with the module: in_dim -> out_dim//2 -> out_dim.
    batch, seq = 2, 8
    in_dim, out_dim = 32, 32
    hid = out_dim // 2

    key = jax.random.PRNGKey(0)
    kx, kw1, kb1, kw2, kb2 = jax.random.split(key, 5)

    x = jax.random.normal(kx, (batch, seq, in_dim), dtype=jnp.float32)

    # gain for w_init_gain='linear' is 1.0
    w1 = xavier_uniform(kw1, in_dim, hid, gain=1.0)        # [in_dim, hid]
    b1 = torch_linear_bias(kb1, in_dim, hid)               # [hid]
    w2 = xavier_uniform(kw2, hid, out_dim, gain=1.0)       # [hid, out_dim]
    b2 = torch_linear_bias(kb2, hid, out_dim)              # [out_dim]

    # One-time parameter prep (padding hoisted out of the hot path).
    params = prepare_decoder_prenet_params(w1, b1, w2, b2,
                                           compute_dtype=jnp.float32)

    y = decoder_prenet_apply(x, params)
    y = jax.block_until_ready(y)

    # Reference check in plain JAX (same eval-mode semantics, unpadded weights,
    # highest-precision matmuls to match the kernel's f32 path).
    hp = jax.lax.Precision.HIGHEST
    x2 = x.reshape(-1, in_dim)
    ref = jnp.dot(jnp.dot(x2, w1, precision=hp) + b1, w2, precision=hp) + b2
    ref = ref.reshape(batch, seq, out_dim)

    assert y.shape == (batch, seq, out_dim)
    assert jnp.allclose(y, ref, atol=1e-4, rtol=1e-4), (
        float(jnp.max(jnp.abs(y - ref))))

    print("KERNEL_OK")
</pallas_src>

<mosaic_0001>
module attributes {stable_mosaic.version = 11 : i64} {
  func.func @decoder_prenet_kernel(%arg0: i32, %arg1: memref<8x32xf32, #tpu.memory_space<vmem>>, %arg2: memref<32x128xf32, #tpu.memory_space<vmem>>, %arg3: memref<1x128xf32, #tpu.memory_space<vmem>>, %arg4: memref<128x128xf32, #tpu.memory_space<vmem>>, %arg5: memref<1x128xf32, #tpu.memory_space<vmem>>, %arg6: memref<8x128xf32, #tpu.memory_space<vmem>>) attributes {dimension_semantics = [#tpu.dimension_semantics<parallel>], iteration_bounds = array<i64: 2>, scalar_prefetch = 0 : i64, scratch_operands = 0 : i64, tpu.core_type = #tpu.core_type<tc>, window_params = [{transform_indices = @transform_0, window_bounds = array<i64: 8, 32>}, {pipeline_mode = #tpu.pipeline_mode<synchronous>, transform_indices = @transform_1, window_bounds = array<i64: 32, 128>}, {pipeline_mode = #tpu.pipeline_mode<synchronous>, transform_indices = @transform_2, window_bounds = array<i64: 1, 128>}, {pipeline_mode = #tpu.pipeline_mode<synchronous>, transform_indices = @transform_3, window_bounds = array<i64: 128, 128>}, {pipeline_mode = #tpu.pipeline_mode<synchronous>, transform_indices = @transform_4, window_bounds = array<i64: 1, 128>}, {transform_indices = @transform_5, window_bounds = array<i64: 8, 128>}]} {
    %c0 = arith.constant 0 : index
    %c0_0 = arith.constant 0 : index
    %0 = vector.load %arg1[%c0, %c0_0] : memref<8x32xf32, #tpu.memory_space<vmem>>, vector<8x32xf32>
    %c0_1 = arith.constant 0 : index
    %c0_2 = arith.constant 0 : index
    %1 = vector.load %arg2[%c0_1, %c0_2] : memref<32x128xf32, #tpu.memory_space<vmem>>, vector<32x128xf32>
    %cst = arith.constant dense<0.000000e+00> : vector<8x128xf32>
    %2 = tpu.matmul %0, %1, %cst {dimension_numbers = #tpu.dot_dimension_numbers<[1], [0], [0], [1], [0, 0, 1, 1], [], []>, precision = #tpu.contract_precision<fp32>} : vector<8x32xf32>, vector<32x128xf32>, vector<8x128xf32> -> vector<8x128xf32>
    %c0_3 = arith.constant 0 : index
    %c0_4 = arith.constant 0 : index
    %3 = vector.load %arg3[%c0_3, %c0_4] : memref<1x128xf32, #tpu.memory_space<vmem>>, vector<1x128xf32>
    %4 = vector.broadcast %3 : vector<1x128xf32> to vector<8x128xf32>
    %5 = arith.addf %2, %4 : vector<8x128xf32>
    %c0_5 = arith.constant 0 : index
    %c0_6 = arith.constant 0 : index
    %6 = vector.load %arg4[%c0_5, %c0_6] : memref<128x128xf32, #tpu.memory_space<vmem>>, vector<128x128xf32>
    %cst_7 = arith.constant dense<0.000000e+00> : vector<8x128xf32>
    %7 = tpu.matmul %5, %6, %cst_7 {dimension_numbers = #tpu.dot_dimension_numbers<[1], [0], [0], [1], [0, 0, 1, 1], [], []>, precision = #tpu.contract_precision<fp32>} : vector<8x128xf32>, vector<128x128xf32>, vector<8x128xf32> -> vector<8x128xf32>
    %c0_8 = arith.constant 0 : index
    %c0_9 = arith.constant 0 : index
    %8 = vector.load %arg5[%c0_8, %c0_9] : memref<1x128xf32, #tpu.memory_space<vmem>>, vector<1x128xf32>
    %9 = vector.broadcast %8 : vector<1x128xf32> to vector<8x128xf32>
    %10 = arith.addf %7, %9 : vector<8x128xf32>
    %c0_10 = arith.constant 0 : index
    %c0_11 = arith.constant 0 : index
    %11 = vector.load %arg6[%c0_10, %c0_11] : memref<8x128xf32, #tpu.memory_space<vmem>>, vector<8x128xf32>
    tpu.vector_store %arg6[%c0_10, %c0_11], %10 {strides = array<i32>} : memref<8x128xf32, #tpu.memory_space<vmem>>, vector<8x128xf32>,
    return
  }
  func.func @transform_0(%arg0: i32) -> (i32, i32) {
    %c0_i32 = arith.constant 0 : i32
    %c0_i32_0 = arith.constant 0 : i32
    return %arg0, %c0_i32 : i32, i32
  }
  func.func @transform_1(%arg0: i32) -> (i32, i32) {
    %c0_i32 = arith.constant 0 : i32
    %c0_i32_0 = arith.constant 0 : i32
    %c0_i32_1 = arith.constant 0 : i32
    return %c0_i32, %c0_i32_0 : i32, i32
  }
  func.func @transform_2(%arg0: i32) -> (i32, i32) {
    %c0_i32 = arith.constant 0 : i32
    %c0_i32_0 = arith.constant 0 : i32
    %c0_i32_1 = arith.constant 0 : i32
    return %c0_i32, %c0_i32_0 : i32, i32
  }
  func.func @transform_3(%arg0: i32) -> (i32, i32) {
    %c0_i32 = arith.constant 0 : i32
    %c0_i32_0 = arith.constant 0 : i32
    %c0_i32_1 = arith.constant 0 : i32
    return %c0_i32, %c0_i32_0 : i32, i32
  }
  func.func @transform_4(%arg0: i32) -> (i32, i32) {
    %c0_i32 = arith.constant 0 : i32
    %c0_i32_0 = arith.constant 0 : i32
    %c0_i32_1 = arith.constant 0 : i32
    return %c0_i32, %c0_i32_0 : i32, i32
  }
  func.func @transform_5(%arg0: i32) -> (i32, i32) {
    %c0_i32 = arith.constant 0 : i32
    %c0_i32_0 = arith.constant 0 : i32
    return %arg0, %c0_i32 : i32, i32
  }
}

module attributes {stable_mosaic.version = 11 : i64} {
  func.func @decoder_prenet_kernel(%arg0: i32, %arg1: memref<8x32xf32, #tpu.memory_space<vmem>>, %arg2: memref<32x128xf32, #tpu.memory_space<vmem>>, %arg3: memref<1x128xf32, #tpu.memory_space<vmem>>, %arg4: memref<128x128xf32, #tpu.memory_space<vmem>>, %arg5: memref<1x128xf32, #tpu.memory_space<vmem>>, %arg6: memref<8x128xf32, #tpu.memory_space<vmem>>) attributes {dimension_semantics = [#tpu.dimension_semantics<parallel>], iteration_bounds = array<i64: 2>, scalar_prefetch = 0 : i64, scratch_operands = 0 : i64, tpu.core_type = #tpu.core_type<tc>, window_params = [{transform_indices = @transform_0, window_bounds = array<i64: 8, 32>}, {pipeline_mode = #tpu.pipeline_mode<synchronous>, transform_indices = @transform_1, window_bounds = array<i64: 32, 128>}, {pipeline_mode = #tpu.pipeline_mode<synchronous>, transform_indices = @transform_2, window_bounds = array<i64: 1, 128>}, {pipeline_mode = #tpu.pipeline_mode<synchronous>, transform_indices = @transform_3, window_bounds = array<i64: 128, 128>}, {pipeline_mode = #tpu.pipeline_mode<synchronous>, transform_indices = @transform_4, window_bounds = array<i64: 1, 128>}, {transform_indices = @transform_5, window_bounds = array<i64: 8, 128>}]} {
    %c0 = arith.constant 0 : index
    %c0_0 = arith.constant 0 : index
    %0 = vector.load %arg1[%c0, %c0_0] : memref<8x32xf32, #tpu.memory_space<vmem>>, vector<8x32xf32>
    %c0_1 = arith.constant 0 : index
    %c0_2 = arith.constant 0 : index
    %1 = vector.load %arg2[%c0_1, %c0_2] : memref<32x128xf32, #tpu.memory_space<vmem>>, vector<32x128xf32>
    %cst = arith.constant dense<0.000000e+00> : vector<8x128xf32>
    %2 = tpu.matmul %0, %1, %cst {dimension_numbers = #tpu.dot_dimension_numbers<[1], [0], [0], [1], [0, 0, 1, 1], [], []>, precision = #tpu.contract_precision<fp32>} : vector<8x32xf32>, vector<32x128xf32>, vector<8x128xf32> -> vector<8x128xf32>
    %c0_3 = arith.constant 0 : index
    %c0_4 = arith.constant 0 : index
    %3 = vector.load %arg3[%c0_3, %c0_4] : memref<1x128xf32, #tpu.memory_space<vmem>>, vector<1x128xf32>
    %4 = vector.broadcast %3 : vector<1x128xf32> to vector<8x128xf32>
    %5 = arith.addf %2, %4 : vector<8x128xf32>
    %c0_5 = arith.constant 0 : index
    %c0_6 = arith.constant 0 : index
    %6 = vector.load %arg4[%c0_5, %c0_6] : memref<128x128xf32, #tpu.memory_space<vmem>>, vector<128x128xf32>
    %cst_7 = arith.constant dense<0.000000e+00> : vector<8x128xf32>
    %7 = tpu.matmul %5, %6, %cst_7 {dimension_numbers = #tpu.dot_dimension_numbers<[1], [0], [0], [1], [0, 0, 1, 1], [], []>, precision = #tpu.contract_precision<fp32>} : vector<8x128xf32>, vector<128x128xf32>, vector<8x128xf32> -> vector<8x128xf32>
    %c0_8 = arith.constant 0 : index
    %c0_9 = arith.constant 0 : index
    %8 = vector.load %arg5[%c0_8, %c0_9] : memref<1x128xf32, #tpu.memory_space<vmem>>, vector<1x128xf32>
    %9 = vector.broadcast %8 : vector<1x128xf32> to vector<8x128xf32>
    %10 = arith.addf %7, %9 : vector<8x128xf32>
    %c0_10 = arith.constant 0 : index
    %c0_11 = arith.constant 0 : index
    %11 = vector.load %arg6[%c0_10, %c0_11] : memref<8x128xf32, #tpu.memory_space<vmem>>, vector<8x128xf32>
    tpu.vector_store %arg6[%c0_10, %c0_11], %10 {strides = array<i32>} : memref<8x128xf32, #tpu.memory_space<vmem>>, vector<8x128xf32>,
    return
  }
  func.func @transform_0(%arg0: i32) -> (i32, i32) {
    %c0_i32 = arith.constant 0 : i32
    %c0_i32_0 = arith.constant 0 : i32
    return %arg0, %c0_i32 : i32, i32
  }
  func.func @transform_1(%arg0: i32) -> (i32, i32) {
    %c0_i32 = arith.constant 0 : i32
    %c0_i32_0 = arith.constant 0 : i32
    %c0_i32_1 = arith.constant 0 : i32
    return %c0_i32, %c0_i32_0 : i32, i32
  }
  func.func @transform_2(%arg0: i32) -> (i32, i32) {
    %c0_i32 = arith.constant 0 : i32
    %c0_i32_0 = arith.constant 0 : i32
    %c0_i32_1 = arith.constant 0 : i32
    return %c0_i32, %c0_i32_0 : i32, i32
  }
  func.func @transform_3(%arg0: i32) -> (i32, i32) {
    %c0_i32 = arith.constant 0 : i32
    %c0_i32_0 = arith.constant 0 : i32
    %c0_i32_1 = arith.constant 0 : i32
    return %c0_i32, %c0_i32_0 : i32, i32
  }
  func.func @transform_4(%arg0: i32) -> (i32, i32) {
    %c0_i32 = arith.constant 0 : i32
    %c0_i32_0 = arith.constant 0 : i32
    %c0_i32_1 = arith.constant 0 : i32
    return %c0_i32, %c0_i32_0 : i32, i32
  }
  func.func @transform_5(%arg0: i32) -> (i32, i32) {
    %c0_i32 = arith.constant 0 : i32
    %c0_i32_0 = arith.constant 0 : i32
    return %arg0, %c0_i32 : i32, i32
  }
}

</mosaic_0001>

<bundles_post_ra>
// kernel: tpu_custom_call.1
= control target key start
LH: loop header
LB: loop body
LE: loop exit
PB: predicated region body
PF: predicated region fallthrough
CT: control target
= control target key end

     0   :  { %10 = vsyncpa [#allocation3], 0  ;;  %s1663_s0 = inlined_call_operand.hbm [shape: f32[16,32], index: 0, kind: input, shape index: {}]   ;;  %s1664_s1 = inlined_call_operand.hbm [shape: f32[32,128], index: 1, kind: input, shape index: {}]   ;;  %s1665_s2 = inlined_call_operand.vmem [shape: f32[1,128], index: 2, kind: input, shape index: {}]   ;;  %s1666_s3 = inlined_call_operand.hbm [shape: f32[128,128], index: 3, kind: input, shape index: {}]   ;;  %s1667_s4 = inlined_call_operand.vmem [shape: f32[1,128], index: 4, kind: input, shape index: {}]   ;;  %s1668_s5 = inlined_call_operand.hbm [shape: f32[16,128], index: 5, kind: output, shape index: {}]  }
   0x1   :  { %12 = vsyncpa [#allocation3 + $0x1], 0 }
   0x2   :  { %13 = vsyncpa [#allocation6], 0 }
   0x3   :  { %14 = vsyncpa [#allocation4], 0 }
   0x4   :  { %16 = vsyncpa [#allocation4 + $0x1], 0  ;;  %s1223_s18 = smov 0   ;;  %s1225_s19 = smov 0  }
   0x5   :  { %s1227_s20 = smov 0   ;;  %s1229_s21 = smov 0  }
   0x6 LB: > { %s174_s24 = sshll.u32 %s1664_s1, 4  ;;  %s1247_s25 = sadd.s32 4294967295, %s1187_s21   ;;  %s1187_s21 = sphi %s1229_s21, %s1679_s21   ;;  %s1183_s20 = sphi %s1227_s20, %s1678_s20   ;;  %s1179_s19 = sphi %s1225_s19, %s1677_s19   ;;  %s1175_s18 = sphi %s1223_s18, %s1676_s18   ;;  %s175_s24 = int_to_ptr.hbm [resolvable:$true] %s174_s24 }
   0x7   : > { %p941_p0 = scmp.ge.s32.totalorder %s1187_s21, 1  ;;  %p43_p1 = scmp.eq.s32.totalorder %s1247_s25, 0 }
   0x8   : > { %p163_p2 = scmp.lt.s32.totalorder %s1187_s21, 3  ;;  %s1189_s27 = smov [#allocation5]  }
   0x9   : > { %s176_s28 = sshll.u32 %s1189_s27, 4  ;;  %s191_s6 = sshll.u32 %s1666_s3, 4  ;;  %s177_s28 = int_to_ptr.vmem [resolvable:$true] %s176_s28  ;;  %s192_s6 = int_to_ptr.hbm [resolvable:$true] %s191_s6 }
   0xa   : > { %p1252_p3 = pnand %p941_p0, %p163_p2  ;;  %s1190_s7 = smov [#allocation7]  }
   0xb   : > { %s193_s8 = sshll.u32 %s1190_s7, 4  ;;  %s1191_s9 = smov 128   ;;  %s194_s8 = int_to_ptr.vmem [resolvable:$true] %s193_s8 }
   0xc   : > { %p968_p4 = pneg %p1252_p3  ;;  %s1192_s10 = smov 8  }
   0xd   : > { %s940_s11 = sadd.s32 4294967294, %s1187_s21   ;;  %s1266_s12 = sadd.s32 1, %s1187_s21  }
   0xe   : > { %p969_p6 = pnand %p968_p4, %p43_p1  ;;  %s26_s13 = ssub.s32 %s1187_s21, %s1266_s12 }
   0xf   : > { %s29_s14 = sadd.s32 1, %s1183_s20  ;;  %p27_p7 = scmp.eq.s32.totalorder %s26_s13, 0 }
  0x10   : > { %971 = dma.hbm_to_vmem [thread:$0]  (!%p969_p6), %s175_s24, 512, %s177_s28, [#allocation6], %s1191_s9, %s1191_s9, %s1192_s10  }
  0x11   : > { %974 = dma.hbm_to_vmem [thread:$0]  (!%p969_p6), %s192_s6, 2048, %s194_s8, [#allocation6], %s1191_s9, %s1191_s9, %s1192_s10  }
  0x12   : > { %p36_p8 = scmp.ne.s32.totalorder %s1183_s20, %s1179_s19  ;;  %p37_p9 = scmp.eq.s32.totalorder %s1187_s21, 0 }
  0x13   : > { %p42_p10 = scmp.ne.s32.totalorder %s1179_s19, %s1175_s18  ;;  %p150_p13 = scmp.eq.s32.totalorder %s1247_s25, 1 }
  0x14   : > { %s1277_s15 = scalar_select %p27_p7, %s1183_s20, %s29_s14  }
  0x15   : > { %p1279_p11 = por %p37_p9, %p36_p8  ;;  %p1285_p12 = por %p43_p1, %p42_p10 }
  0x16   : > { %p156_p0 = scmp.eq.s32.totalorder %s940_s11, 1  ;;  %p985_p2 = scmp.lt.s32.totalorder %s1187_s21, 2 }
  0x17   : > { %s210_s22 = sand.u32 1, %s1183_s20   ;;  %p1292_p4 = por %p150_p13, %p36_p8 }
  0x18   : > { %p1296_p6 = por %p156_p0, %p42_p10  ;;  %s945_s27 = sshll.u32 %s210_s22, 3 }
  0x19   : > { %s946_s28 = sshll.u32 %s1187_s21, 3  ;;  %s214_s7 = scalar_lea.vmem [#allocation2], %s945_s27 }
  0x1a   : > { %s218_s6 = scalar_lea.hbm %s1663_s0, %s946_s28  ;;  %s222_s8 = sshll.u32 %s214_s7, 4  ;;  %s223_s8 = int_to_ptr.vmem [resolvable:$true] %s222_s8 }
  0x1b   : > { %s220_s9 = sshll.u32 %s218_s6, 4  ;;  %p1306_p7 = pnand %p985_p2, %p1279_p11  ;;  %s221_s9 = int_to_ptr.hbm [resolvable:$true] %s220_s9 }
  0x1c   : > { %s211_s11 = scalar_lea.sflag [#allocation3], %s210_s22  ;;  %s1087_s13 = sshra.s32 %s221_s9, 4  ;;  %s1088_s13 = int_to_ptr.hbm [resolvable:$true] %s1087_s13 }
  0x1d   : > { %s1089_s14 = scalar_lea.hbm %s1088_s13, 8  ;;  %p1091_p9 = pneg %p1306_p7 }
  0x1e   : > { %p1090_p8 = scmp.ne.s32.totalorder %s1088_s13, %s1089_s14  ;;  %s1094_s29 = scalar_lea.hbm %s1663_s0, 16 }
  0x1f   : > { %p1095_p11 = scmp.lt.s32.totalorder %s1088_s13, %s1663_s0  ;;  %p1096_p0 = scmp.lt.s32.totalorder %s1094_s29, %s1089_s14 }
  0x20   : > { %p1092_p10 = pnand %p1091_p9, %p1090_p8 }
  0x21   : > { %p1097_p2 = por %p1096_p0, %p1095_p11 }
  0x22   : > { %p1093_p13 = pneg %p1092_p10 }
  0x24   : > { %p1098_p5 = pnand %p1097_p2, %p1093_p13 }
  0x26   : > { %1101 = shalt.err (!%p1098_p5)
}
  0x27   : > { %978 = dma.hbm_to_vmem [thread:$0]  (!%p1306_p7), %s221_s9, 128, %s223_s8, %s211_s11  }
  0x28   : > { %231 = sbr.rel (%p1252_p3) target bundleno = 367 (0x16f), region = 40  ;;  %s1323_s22 = sand.u32 (!%p1252_p3), 1, %s1179_s19  }
  0x29   : > { %s948_s6 = sshll.u32 (!%p1252_p3), %s1323_s22, 3  ;;  %s234_s7 = scalar_lea.sflag (!%p1252_p3), [#allocation3], %s1323_s22 }
  0x2a   : > { %s237_s13 = scalar_lea.vmem (!%p1252_p3), [#allocation2], %s948_s6 }
  0x2d   : > { %1162 = dma.done.wait (%p1285_p12), %s234_s7, 128  }
  0x2e   : > { %1164 = vsyncadd (%p1285_p12), %s234_s7, 4294967168 }
  0x2f   : > { %1166 = dma.done.wait (%p43_p1), [#allocation6], 2560  }
  0x30   : > { %1168 = vsyncadd (%p43_p1), [#allocation6], 4294964736  ;;  %vm284_vm0 = vcmask 261120   ;;  %v279_v0 = vld [vmem:[#allocation5 + $0x18] sm:$0xff]  ;;  %v278_v1 = vld [vmem:[#allocation5 + $0x10] sm:$0xff]  ;;  %s953_s10 = sshll.u32 %s1247_s25, 3 }
  0x31   : > { %v277_v2 = vld [vmem:[#allocation5 + $0x8] sm:$0xff]  ;;  %v1337_v3 = vand.u32 4294901760, %v279_v0  ;;  %v1339_v4 = vand.u32 4294901760, %v278_v1  ;;  %v276_v6 = vld [vmem:[#allocation5] sm:$0xff]  ;;  %v275_v7 = vld [vmem:[%s237_s13] sm:$0xff]  ;;  %s846_s27 = scalar_lea.hbm %s1668_s5, %s953_s10  ;;  %s274_s28 = scalar_lea.vmem [#allocation8], %s948_s6 }
  0x32   : > { %v1341_v5 = vand.u32 4294901760, %v277_v2  ;;  %v1343_v8 = vand.u32 4294901760, %v276_v6  ;;  %v286_v9 = vsel %vm284_vm0, %v275_v7, 0  ;;  %v488_v10 = vld [vmem:[#allocation7 + $0x78] sm:$0xff]  ;;  %v487_v11 = vld [vmem:[#allocation7 + $0x70] sm:$0xff]  ;;  %v486_v12 = vld [vmem:[#allocation7 + $0x68] sm:$0xff] }
  0x33   : > { %301 = vmatpush.msra.mxu0 %v1337_v3  ;;  %v1347_v13 = vsub.f32 %v279_v0, %v1337_v3  ;;  %v1349_v14 = vand.u32 4294901760, %v286_v9  ;;  %v1352_v15 = vsub.f32 %v278_v1, %v1339_v4  ;;  %v1360_v18 = vand.u32 4294901760, %v488_v10  ;;  %v485_v37 = vld [vmem:[#allocation7 + $0x60] sm:$0xff]  ;;  %v484_v38 = vld [vmem:[#allocation7 + $0x58] sm:$0xff]  ;;  %v483_v39 = vld [vmem:[#allocation7 + $0x50] sm:$0xff]  ;;  %s848_s29 = sshll.u32 %s274_s28, 4  ;;  %s849_s29 = int_to_ptr.vmem [resolvable:$true] %s848_s29 }
  0x34   : > { %v1355_v16 = vsub.f32 %v277_v2, %v1341_v5  ;;  %v1358_v17 = vsub.f32 %v276_v6, %v1343_v8  ;;  %v1362_v19 = vand.u32 4294901760, %v487_v11  ;;  %v1364_v20 = vand.u32 4294901760, %v486_v12  ;;  %v482_v43 = vld [vmem:[#allocation7 + $0x48] sm:$0xff]  ;;  %v481_v48 = vld [vmem:[#allocation7 + $0x40] sm:$0xff]  ;;  %v480_v53 = vld [vmem:[#allocation7 + $0x38] sm:$0xff]  ;;  %s850_s30 = sshll.u32 %s846_s27, 4  ;;  %s851_s30 = int_to_ptr.hbm [resolvable:$true] %s850_s30 }
  0x35   : > { %303 = vmatpush.msra.mxu0 %v1339_v4  ;;  %v331_v21 = vand.u32 4294901760, %v1347_v13  ;;  %v1369_v22 = vsub.f32 %v286_v9, %v1349_v14  ;;  %v337_v23 = vand.u32 4294901760, %v1352_v15  ;;  %v1375_v26 = vsub.f32 %v488_v10, %v1360_v18  ;;  %494 = vmatpush.msra.mxu2 %v1360_v18  ;;  %v479_v54 = vld [vmem:[#allocation7 + $0x30] sm:$0xff]  ;;  %v478_v63 = vld [vmem:[#allocation7 + $0x28] sm:$0xff]  ;;  %s836_s25 = scalar_lea.sflag [#allocation4], %s1323_s22  ;;  %s1131_s16 = sshra.s32 %s851_s30, 4  ;;  %s1132_s16 = int_to_ptr.hbm [resolvable:$true] %s1131_s16 }
  0x36   : > { %v343_v24 = vand.u32 4294901760, %v1355_v16  ;;  %v349_v25 = vand.u32 4294901760, %v1358_v17  ;;  %v1378_v27 = vsub.f32 %v487_v11, %v1362_v19  ;;  %v1381_v28 = vsub.f32 %v486_v12, %v1364_v20  ;;  %s1133_s7 = scalar_lea.hbm %s1132_s16, 8  ;;  %s1137_s6 = scalar_lea.hbm %s1668_s5, 16 }
  0x37   : > { %305 = vmatpush.msra.mxu0 %v1341_v5  ;;  %v332_v29 = vsub.f32 %v1347_v13, %v331_v21  ;;  %v310_v30 = vand.u32 4294901760, %v1369_v22  ;;  %v338_v31 = vsub.f32 %v1352_v15, %v337_v23  ;;  %v536_v34 = vand.u32 4294901760, %v1375_v26  ;;  %496 = vmatpush.msra.mxu2 %v1362_v19  ;;  %p1134_p1 = scmp.ne.s32.totalorder %s1132_s16, %s1133_s7  ;;  %p1138_p12 = scmp.lt.s32.totalorder %s1132_s16, %s1668_s5 }
  0x38   : > { %v344_v32 = vsub.f32 %v1355_v16, %v343_v24  ;;  %v350_v33 = vsub.f32 %v1358_v17, %v349_v25  ;;  %v542_v35 = vand.u32 4294901760, %v1378_v27  ;;  %v548_v36 = vand.u32 4294901760, %v1381_v28  ;;  %p1139_p7 = scmp.lt.s32.totalorder %s1137_s6, %s1133_s7 }
  0x39   : > { %307 = vmatpush.msra.mxu0 %v1343_v8  ;;  %v333_v40 = vand.u32 4294901760, %v332_v29  ;;  %v311_v41 = vsub.f32 %v1369_v22, %v310_v30  ;;  %v339_v42 = vand.u32 4294901760, %v338_v31  ;;  %v537_v45 = vsub.f32 %v1375_v26, %v536_v34  ;;  %498 = vmatpush.msra.mxu2 %v1364_v20  ;;  %p1135_p3 = pnand %p1134_p1, %p1292_p4 }
  0x3a   : > { %v345_v44 = vand.u32 4294901760, %v344_v32  ;;  %v543_v46 = vsub.f32 %v1378_v27, %v542_v35  ;;  %v549_v47 = vsub.f32 %v1381_v28, %v548_v36  ;;  %v1417_v50 = vand.u32 4294901760, %v485_v37  ;;  %p1140_p8 = por %p1139_p7, %p1138_p12 }
  0x3b   : > { %372 = vmatpush.msrb.mxu0 %v1347_v13  ;;  %334 = vmatpush.msra.mxu1 %v333_v40  ;;  %v312_v49 = vand.u32 4294901760, %v311_v41  ;;  %v1419_v51 = vand.u32 4294901760, %v484_v38  ;;  %v1421_v52 = vand.u32 4294901760, %v483_v39  ;;  %v351_v55 = vand.u32 4294901760, %v350_v33  ;;  %v475_v41 = vld [vmem:[#allocation7 + $0x10] sm:$0xff]  ;;  %p1136_p5 = pneg %p1135_p3 }
  0x3c   : > { %v538_v56 = vand.u32 4294901760, %v537_v45  ;;  %v544_v57 = vand.u32 4294901760, %v543_v46  ;;  %v1424_v58 = vand.u32 4294901760, %v482_v43  ;;  %v1427_v59 = vsub.f32 %v485_v37, %v1417_v50  ;;  %500 = vmatpush.msra.mxu2 %v1417_v50 }
  0x3d   : > { %375 = vmatpush.msrb.mxu0 %v1352_v15  ;;  %340 = vmatpush.msra.mxu1 %v339_v42  ;;  %v1430_v60 = vsub.f32 %v484_v38, %v1419_v51  ;;  %v1433_v61 = vsub.f32 %v483_v39, %v1421_v52  ;;  %v1435_v62 = vand.u32 4294901760, %v481_v48  ;;  %v550_v0 = vand.u32 4294901760, %v549_v47  ;;  %v476_v39 = vld [vmem:[#allocation7 + $0x18] sm:$0xff]  ;;  %p1141_p9 = pnand %p1140_p8, %p1136_p5 }
  0x3e   : > { %313 = vmatmul.f32.vlgmr.msra.gmra.mxu0 %v312_v49  ;;  %539 = vmatpush.msra.mxu3 %v538_v56  ;;  %v1439_v1 = vsub.f32 %v482_v43, %v1424_v58  ;;  %v1441_v2 = vand.u32 4294901760, %v480_v53  ;;  %v1443_v6 = vand.u32 4294901760, %v479_v54  ;;  %v554_v7 = vand.u32 4294901760, %v1427_v59 }
  0x3f   : > { %378 = vmatpush.msrb.mxu0 %v1355_v16  ;;  %346 = vmatpush.msra.mxu1 %v345_v44  ;;  %v560_v9 = vand.u32 4294901760, %v1430_v60  ;;  %v566_v10 = vand.u32 4294901760, %v1433_v61  ;;  %v1450_v11 = vsub.f32 %v481_v48, %v1435_v62  ;;  %v1457_v31 = vand.u32 4294901760, %v478_v63 }
  0x40   : > { %545 = vmatpush.msra.mxu3 %v544_v57  ;;  %v572_v12 = vand.u32 4294901760, %v1439_v1  ;;  %v1455_v29 = vsub.f32 %v480_v53, %v1441_v2  ;;  %v555_v32 = vsub.f32 %v1427_v59, %v554_v7  ;;  %v1473_v13 = vsub.f32 %v479_v54, %v1443_v6  ;;  %502 = vmatpush.msra.mxu2 %v1419_v51 }
  0x41   : > { %381 = vmatpush.msrb.mxu0 %v1358_v17  ;;  %352 = vmatpush.msra.mxu1 %v351_v55  ;;  %v561_v33 = vsub.f32 %v1430_v60, %v560_v9  ;;  %v567_v37 = vsub.f32 %v1433_v61, %v566_v10  ;;  %v578_v38 = vand.u32 4294901760, %v1450_v11  ;;  %v1484_v45 = vsub.f32 %v478_v63, %v1457_v31 }
  0x42   : > { %354 = vmatmul.f32.vlgmr.msra.gmra.mxu1 %v1349_v14  ;;  %551 = vmatpush.msra.mxu3 %v550_v0  ;;  %v556_v40 = vand.u32 4294901760, %v555_v32  ;;  %v573_v43 = vsub.f32 %v1439_v1, %v572_v12  ;;  %v584_v44 = vand.u32 4294901760, %v1455_v29  ;;  %v590_v48 = vand.u32 4294901760, %v1473_v13 }
  0x43   : > { %430 = vmatpush.msra.mxu0 %v331_v21  ;;  %v477_v21 = vld [vmem:[#allocation7 + $0x20] sm:$0xff]  ;;  %401 = vmatpush.msrb.mxu1 %v1337_v3  ;;  %v562_v42 = vand.u32 4294901760, %v561_v33  ;;  %v568_v46 = vand.u32 4294901760, %v567_v37  ;;  %v579_v47 = vsub.f32 %v1450_v11, %v578_v38  ;;  %v1498_v49 = vand.u32 4294901760, %v475_v41 }
  0x44   : > { %v1488_v15 = vand.u32 4294901760, %v477_v21  ;;  %557 = vmatpush.msra.mxu3 %v556_v40  ;;  %504 = vmatpush.msra.mxu2 %v1421_v52  ;;  %v574_v16 = vand.u32 4294901760, %v573_v43  ;;  %v596_v54 = vand.u32 4294901760, %v1484_v45  ;;  %v473_v40 = vld [vmem:[#allocation7] sm:$0xff] }
  0x45   : > { %434 = vmatpush.msra.mxu0 %v337_v23  ;;  %403 = vmatpush.msrb.mxu1 %v1339_v4  ;;  %v1490_v23 = vand.u32 4294901760, %v476_v39  ;;  %v580_v17 = vand.u32 4294901760, %v579_v47  ;;  %v1523_v57 = vsub.f32 %v475_v41, %v1498_v49 }
  0x46   : > { %384 = vmatmul.f32.vlgmr.msrb.gmra.mxu0 %v1369_v22  ;;  %v1503_v53 = vsub.f32 %v477_v21, %v1488_v15  ;;  %563 = vmatpush.msra.mxu3 %v562_v42  ;;  %v597_v22 = vsub.f32 %v1484_v45, %v596_v54  ;;  %v523_v42 = vand.u32 4294901760, %v473_v40 }
  0x47   : > { %438 = vmatpush.msra.mxu0 %v343_v24  ;;  %405 = vmatpush.msrb.mxu1 %v1341_v5  ;;  %v585_v24 = vsub.f32 %v1455_v29, %v584_v44  ;;  %v1512_v55 = vsub.f32 %v476_v39, %v1490_v23  ;;  %v614_v32 = vand.u32 4294901760, %v1523_v57 }
  0x48   : > { %506 = vmatpush.msra.mxu2 %v1424_v58  ;;  %569 = vmatpush.msra.mxu3 %v568_v46  ;;  %v602_v56 = vand.u32 4294901760, %v1503_v53  ;;  %v598_v33 = vand.u32 4294901760, %v597_v22  ;;  %v625_v46 = vsub.f32 %v473_v40, %v523_v42 }
  0x49   : > { %442 = vmatpush.msra.mxu0 %v349_v25  ;;  %407 = vmatpush.msrb.mxu1 %v1343_v8  ;;  %v591_v25 = vsub.f32 %v1473_v13, %v590_v48  ;;  %v586_v63 = vand.u32 4294901760, %v585_v24 }
  0x4a   : > { %411 = vmatmul.f32.vlgmr.msrb.gmra.mxu1 %v310_v30  ;;  %508 = vmatpush.msra.mxu2 %v1435_v62  ;;  %v608_v30 = vand.u32 4294901760, %v1512_v55 }
  0x4b   : > { %461 = vmatpush.msra.mxu1 %v1337_v3  ;;  %575 = vmatpush.msra.mxu3 %v574_v16  ;;  %v592_v0 = vand.u32 4294901760, %v591_v25  ;;  %v603_v3 = vsub.f32 %v1503_v53, %v602_v56  ;;  %v626_v16 = vand.u32 4294901760, %v625_v46 }
  0x4c   : > { %637 = vmatpush.msrb.mxu0 %v1375_v26  ;;  %510 = vmatpush.msra.mxu2 %v1441_v2 }
  0x4d   : > { %463 = vmatpush.msra.mxu1 %v1339_v4  ;;  %581 = vmatpush.msra.mxu3 %v580_v17  ;;  %v609_v4 = vsub.f32 %v1512_v55, %v608_v30  ;;  %v604_v37 = vand.u32 4294901760, %v603_v3  ;;  %v627_v17 = vsub.f32 %v625_v46, %v626_v16 }
  0x4e   : > { %444 = vmatmul.f32.vlgmr.msra.gmra.mxu0 %v1349_v14  ;;  %512 = vmatpush.msra.mxu2 %v1443_v6 }
  0x4f   : > { %465 = vmatpush.msra.mxu1 %v1341_v5  ;;  %640 = vmatpush.msrb.mxu0 %v1378_v27  ;;  %v615_v5 = vsub.f32 %v1523_v57, %v614_v32  ;;  %v610_v21 = vand.u32 4294901760, %v609_v4  ;;  %v628_v25 = vand.u32 4294901760, %v627_v17 }
  0x50   : > { %587 = vmatpush.msra.mxu3 %v586_v63  ;;  %514 = vmatpush.msra.mxu2 %v1457_v31 }
  0x51   : > { %467 = vmatpush.msra.mxu1 %v1343_v8  ;;  %643 = vmatpush.msrb.mxu0 %v1381_v28  ;;  %v616_v8 = vand.u32 4294901760, %v615_v5 }
  0x52   : > { %469 = vmatmul.f32.vlgmr.msra.gmra.mxu1 %v1349_v14  ;;  %593 = vmatpush.msra.mxu3 %v592_v0  ;;  %v474_v14 = vld [vmem:[#allocation7 + $0x8] sm:$0xff] }
  0x53   : > { %690 = vmatpush.msrb.mxu1 %v1360_v18  ;;  %646 = vmatpush.msrb.mxu0 %v1427_v59  ;;  %v521_v39 = vand.u32 4294901760, %v474_v14 }
  0x54   : > { %599 = vmatpush.msra.mxu3 %v598_v33  ;;  %516 = vmatpush.msra.mxu2 %v1488_v15 }
  0x55   : > { %692 = vmatpush.msrb.mxu1 %v1362_v19  ;;  %649 = vmatpush.msrb.mxu0 %v1430_v60  ;;  %v619_v41 = vsub.f32 %v474_v14, %v521_v39 }
  0x56   : > { %605 = vmatpush.msra.mxu3 %v604_v37  ;;  %518 = vmatpush.msra.mxu2 %v1490_v23 }
  0x57   : > { %694 = vmatpush.msrb.mxu1 %v1364_v20  ;;  %652 = vmatpush.msrb.mxu0 %v1433_v61  ;;  %v620_v43 = vand.u32 4294901760, %v619_v41 }
  0x58   : > { %611 = vmatpush.msra.mxu3 %v610_v21  ;;  %520 = vmatpush.msra.mxu2 %v1498_v49 }
  0x59   : > { %696 = vmatpush.msrb.mxu1 %v1417_v50  ;;  %655 = vmatpush.msrb.mxu0 %v1439_v1  ;;  %v621_v47 = vsub.f32 %v619_v41, %v620_v43 }
  0x5a   : > { %617 = vmatpush.msra.mxu3 %v616_v8  ;;  %522 = vmatpush.msra.mxu2 %v521_v39 }
  0x5b   : > { %698 = vmatpush.msrb.mxu1 %v1419_v51  ;;  %658 = vmatpush.msrb.mxu0 %v1450_v11  ;;  %v622_v24 = vand.u32 4294901760, %v621_v47 }
  0x5c   : > { %524 = vmatpush.msra.mxu2 %v523_v42 }
  0x5d   : > { %700 = vmatpush.msrb.mxu1 %v1421_v52  ;;  %661 = vmatpush.msrb.mxu0 %v1455_v29 }
  0x5e   : > { %731 = vmatpush.msrb.mxu2 %v536_v34  ;;  %623 = vmatpush.msra.mxu3 %v622_v24 }
  0x5f   : > { %702 = vmatpush.msrb.mxu1 %v1424_v58  ;;  %664 = vmatpush.msrb.mxu0 %v1473_v13 }
  0x60   : > { %735 = vmatpush.msrb.mxu2 %v542_v35  ;;  %629 = vmatpush.msra.mxu3 %v628_v25 }
  0x61   : > { %704 = vmatpush.msrb.mxu1 %v1435_v62  ;;  %667 = vmatpush.msrb.mxu0 %v1484_v45 }
  0x62   : > { %739 = vmatpush.msrb.mxu2 %v548_v36  ;;  %798 = vmatpush.msrb.mxu3 %v1360_v18 }
  0x63   : > { %706 = vmatpush.msrb.mxu1 %v1441_v2  ;;  %670 = vmatpush.msrb.mxu0 %v1503_v53 }
  0x64   : > { %743 = vmatpush.msrb.mxu2 %v554_v7  ;;  %800 = vmatpush.msrb.mxu3 %v1362_v19  ;;  %v1025_v19 = vld [vmem:[%s1665_s2] ss:$0 sm:$0xff] }
  0x65   : > { %708 = vmatpush.msrb.mxu1 %v1443_v6  ;;  %673 = vmatpush.msrb.mxu0 %v1512_v55 }
  0x66   : > { %747 = vmatpush.msrb.mxu2 %v560_v9  ;;  %802 = vmatpush.msrb.mxu3 %v1364_v20 }
  0x67   : > { %710 = vmatpush.msrb.mxu1 %v1457_v31  ;;  %676 = vmatpush.msrb.mxu0 %v1523_v57 }
  0x68   : > { %751 = vmatpush.msrb.mxu2 %v566_v10  ;;  %804 = vmatpush.msrb.mxu3 %v1417_v50 }
  0x69   : > { %712 = vmatpush.msrb.mxu1 %v1488_v15  ;;  %679 = vmatpush.msrb.mxu0 %v619_v41 }
  0x6a   : > { %755 = vmatpush.msrb.mxu2 %v572_v12  ;;  %806 = vmatpush.msrb.mxu3 %v1419_v51 }
  0x6b   : > { %714 = vmatpush.msrb.mxu1 %v1490_v23  ;;  %682 = vmatpush.msrb.mxu0 %v625_v46 }
  0x6c   : > { %759 = vmatpush.msrb.mxu2 %v578_v38  ;;  %808 = vmatpush.msrb.mxu3 %v1421_v52 }
  0x6d   : > { %716 = vmatpush.msrb.mxu1 %v1498_v49 }
  0x6e   : > { %763 = vmatpush.msrb.mxu2 %v584_v44  ;;  %810 = vmatpush.msrb.mxu3 %v1424_v58 }
  0x6f   : > { %718 = vmatpush.msrb.mxu1 %v521_v39 }
  0x70   : > { %767 = vmatpush.msrb.mxu2 %v590_v48  ;;  %812 = vmatpush.msrb.mxu3 %v1435_v62 }
  0x71   : > { %720 = vmatpush.msrb.mxu1 %v523_v42 }
  0x72   : > { %771 = vmatpush.msrb.mxu2 %v596_v54  ;;  %814 = vmatpush.msrb.mxu3 %v1441_v2  ;;  %v1026_v2 = vld [vmem:[%s1667_s4] ss:$0 sm:$0xff] }
  0x74   : > { %775 = vmatpush.msrb.mxu2 %v602_v56  ;;  %816 = vmatpush.msrb.mxu3 %v1443_v6 }
  0x76   : > { %779 = vmatpush.msrb.mxu2 %v608_v30  ;;  %818 = vmatpush.msrb.mxu3 %v1457_v31 }
  0x78   : > { %783 = vmatpush.msrb.mxu2 %v614_v32  ;;  %820 = vmatpush.msrb.mxu3 %v1488_v15 }
  0x7a   : > { %787 = vmatpush.msrb.mxu2 %v620_v43  ;;  %822 = vmatpush.msrb.mxu3 %v1490_v23 }
  0x7c   : > { %791 = vmatpush.msrb.mxu2 %v626_v16  ;;  %824 = vmatpush.msrb.mxu3 %v1498_v49 }
  0x7e   : > { %826 = vmatpush.msrb.mxu3 %v521_v39 }
  0x80   : > { %828 = vmatpush.msrb.mxu3 %v523_v42 }
  0xbb   : > { %v314_v18 = vpop.f32.mrf.mxu0 }
  0xbc   : > { %v315_v26 = vadd.f32 %v1025_v19, %v314_v18 }
  0xbf   : > { %v355_v20 = vpop.f32.mrf.mxu1 }
  0xc0   : > { %v356_v28 = vadd.f32 %v355_v20, %v315_v26 }
  0xc3   : > { %v385_v27 = vpop.f32.mrf.mxu0 }
  0xc4   : > { %v386_v35 = vadd.f32 %v385_v27, %v356_v28 }
  0xc7   : > { %v412_v34 = vpop.f32.mrf.mxu1 }
  0xc8   : > { %v413_v36 = vadd.f32 %v412_v34, %v386_v35 }
  0xcb   : > { %v445_v50 = vpop.f32.mrf.mxu0 }
  0xcc   : > { %v446_v51 = vadd.f32 %v445_v50, %v413_v36 }
  0xcf   : > { %v470_v52 = vpop.f32.mrf.mxu1 }
  0xd0   : > { %v471_v58 = vadd.f32 %v470_v52, %v446_v51 }
  0xd2   : > { %v525_v59 = vand.u32 4294901760, %v471_v58 }
  0xd4   : > { %v526_v60 = vsub.f32 %v471_v58, %v525_v59  ;;  %631 = vmatmul.f32.vlgmr.msra.gmra.mxu3 %v525_v59 }
  0xd6   : > { %v527_v61 = vand.u32 4294901760, %v526_v60  ;;  %685 = vmatmul.f32.vlgmr.msrb.gmra.mxu0 %v526_v60 }
  0xd8   : > { %724 = vmatmul.f32.vlgmr.msrb.gmra.mxu1 %v527_v61  ;;  %v528_v62 = vsub.f32 %v526_v60, %v527_v61 }
  0xda   : > { %v529_v1 = vand.u32 4294901760, %v528_v62 }
  0xdc   : > { %530 = vmatmul.f32.vlgmr.msra.gmra.mxu2 %v529_v1  ;;  %830 = vmatmul.f32.vlgmr.msrb.gmra.mxu3 %v525_v59 }
  0xe4   : > { %793 = vmatmul.f32.vlgmr.msrb.gmra.mxu2 %v525_v59 }
 0x153   : > { %v686_v11 = vpop.f32.mrf.mxu0 }
 0x155   : > { %v725_v29 = vpop.f32.mrf.mxu1 }
 0x157   : > { %v632_v6 = vpop.f32.mrf.mxu3 }
 0x15f   : > { %v531_v7 = vpop.f32.mrf.mxu2  ;;  %v831_v44 = vpop.f32.mrf.mxu3 }
 0x160   : > { %v532_v9 = vadd.f32 %v1026_v2, %v531_v7 }
 0x162   : > { %v633_v10 = vadd.f32 %v632_v6, %v532_v9 }
 0x164   : > { %v687_v12 = vadd.f32 %v686_v11, %v633_v10 }
 0x166   : > { %v726_v31 = vadd.f32 %v725_v29, %v687_v12 }
 0x167   : > { %v794_v38 = vpop.f32.mrf.mxu2 }
 0x168   : > { %v795_v13 = vadd.f32 %v794_v38, %v726_v31 }
 0x16a   : > { %v832_v45 = vadd.f32 %v831_v44, %v795_v13 }
 0x16c   : > { %834 = vst [vmem:[%s274_s28] sm:$0xff] %v832_v45 }
 0x16d   : > { %1144 = shalt.err (!%p1141_p9)
}
 0x16e   : > { %966 = dma.vmem_to_hbm [thread:$0]  (%p1292_p4), %s849_s29, 128, %s851_s30, %s836_s25  }
 0x16f PF: > { %s862_s22 = sand.u32 1, %s1175_s18   ;;  %p1675_p10 = scmp.ge.s32.totalorder %s1187_s21, 2 }
 0x170   : > { %s863_s9 = scalar_lea.sflag [#allocation4], %s862_s22 }
 0x171   : > { %p980_p13 = pnand %p1675_p10, %p1296_p6 }
 0x173   : > { %p981_p11 = pneg %p980_p13 }
 0x175   : > { %1170 = dma.done.wait (%p981_p11), %s863_s9, 128  }
 0x176   : > { %1172 = vsyncadd (%p981_p11), %s863_s9, 4294967168  ;;  %p19_p0 = scmp.ge.s32.totalorder %s1266_s12, 4   ;;  %s1676_s18 = smov %s1179_s19 }
 0x177   : > { %s1677_s19 = smov %s1183_s20  ;;  %s1678_s20 = smov %s1277_s15 }
 0x178   : > { %s1679_s21 = smov %s1266_s12  ;;  %21 = sbr.rel (!%p19_p0) target bundleno = 6 (0x6), region = 93 }
 0x17d   :  { %869 = vsyncpa [#allocation3], 1 }
 0x17e   :  { %871 = vsyncpa [#allocation3 + $0x1], 1 }
 0x17f   :  { %872 = vsyncpa [#allocation6], 1 }
 0x180   :  { %873 = vsyncpa [#allocation4], 1 }
 0x181   :  { %875 = vsyncpa [#allocation4 + $0x1], 1 }

// kernel: tpu_custom_call.1
= control target key start
LH: loop header
LB: loop body
LE: loop exit
PB: predicated region body
PF: predicated region fallthrough
CT: control target
= control target key end

     0   :  { %10 = vsyncpa [#allocation3], 0  ;;  %s1663_s0 = inlined_call_operand.hbm [shape: f32[16,32], index: 0, kind: input, shape index: {}]   ;;  %s1664_s1 = inlined_call_operand.hbm [shape: f32[32,128], index: 1, kind: input, shape index: {}]   ;;  %s1665_s2 = inlined_call_operand.vmem [shape: f32[1,128], index: 2, kind: input, shape index: {}]   ;;  %s1666_s3 = inlined_call_operand.hbm [shape: f32[128,128], index: 3, kind: input, shape index: {}]   ;;  %s1667_s4 = inlined_call_operand.vmem [shape: f32[1,128], index: 4, kind: input, shape index: {}]   ;;  %s1668_s5 = inlined_call_operand.hbm [shape: f32[16,128], index: 5, kind: output, shape index: {}]  }
   0x1   :  { %12 = vsyncpa [#allocation3 + $0x1], 0 }
   0x2   :  { %13 = vsyncpa [#allocation6], 0 }
   0x3   :  { %14 = vsyncpa [#allocation4], 0 }
   0x4   :  { %16 = vsyncpa [#allocation4 + $0x1], 0  ;;  %s1223_s18 = smov 0   ;;  %s1225_s19 = smov 0  }
   0x5   :  { %s1227_s20 = smov 0   ;;  %s1229_s21 = smov 0  }
   0x6 LB: > { %s174_s24 = sshll.u32 %s1664_s1, 4  ;;  %s1247_s25 = sadd.s32 4294967295, %s1187_s21   ;;  %s1187_s21 = sphi %s1229_s21, %s1679_s21   ;;  %s1183_s20 = sphi %s1227_s20, %s1678_s20   ;;  %s1179_s19 = sphi %s1225_s19, %s1677_s19   ;;  %s1175_s18 = sphi %s1223_s18, %s1676_s18   ;;  %s175_s24 = int_to_ptr.hbm [resolvable:$true] %s174_s24 }
   0x7   : > { %p941_p0 = scmp.ge.s32.totalorder %s1187_s21, 1  ;;  %p43_p1 = scmp.eq.s32.totalorder %s1247_s25, 0 }
   0x8   : > { %p163_p2 = scmp.lt.s32.totalorder %s1187_s21, 3  ;;  %s1189_s27 = smov [#allocation5]  }
   0x9   : > { %s176_s28 = sshll.u32 %s1189_s27, 4  ;;  %s191_s6 = sshll.u32 %s1666_s3, 4  ;;  %s177_s28 = int_to_ptr.vmem [resolvable:$true] %s176_s28  ;;  %s192_s6 = int_to_ptr.hbm [resolvable:$true] %s191_s6 }
   0xa   : > { %p1252_p3 = pnand %p941_p0, %p163_p2  ;;  %s1190_s7 = smov [#allocation7]  }
   0xb   : > { %s193_s8 = sshll.u32 %s1190_s7, 4  ;;  %s1191_s9 = smov 128   ;;  %s194_s8 = int_to_ptr.vmem [resolvable:$true] %s193_s8 }
   0xc   : > { %p968_p4 = pneg %p1252_p3  ;;  %s1192_s10 = smov 8  }
   0xd   : > { %s940_s11 = sadd.s32 4294967294, %s1187_s21   ;;  %s1266_s12 = sadd.s32 1, %s1187_s21  }
   0xe   : > { %p969_p6 = pnand %p968_p4, %p43_p1  ;;  %s26_s13 = ssub.s32 %s1187_s21, %s1266_s12 }
   0xf   : > { %s29_s14 = sadd.s32 1, %s1183_s20  ;;  %p27_p7 = scmp.eq.s32.totalorder %s26_s13, 0 }
  0x10   : > { %971 = dma.hbm_to_vmem [thread:$0]  (!%p969_p6), %s175_s24, 512, %s177_s28, [#allocation6], %s1191_s9, %s1191_s9, %s1192_s10  }
  0x11   : > { %974 = dma.hbm_to_vmem [thread:$0]  (!%p969_p6), %s192_s6, 2048, %s194_s8, [#allocation6], %s1191_s9, %s1191_s9, %s1192_s10  }
  0x12   : > { %p36_p8 = scmp.ne.s32.totalorder %s1183_s20, %s1179_s19  ;;  %p37_p9 = scmp.eq.s32.totalorder %s1187_s21, 0 }
  0x13   : > { %p42_p10 = scmp.ne.s32.totalorder %s1179_s19, %s1175_s18  ;;  %p150_p13 = scmp.eq.s32.totalorder %s1247_s25, 1 }
  0x14   : > { %s1277_s15 = scalar_select %p27_p7, %s1183_s20, %s29_s14  }
  0x15   : > { %p1279_p11 = por %p37_p9, %p36_p8  ;;  %p1285_p12 = por %p43_p1, %p42_p10 }
  0x16   : > { %p156_p0 = scmp.eq.s32.totalorder %s940_s11, 1  ;;  %p985_p2 = scmp.lt.s32.totalorder %s1187_s21, 2 }
  0x17   : > { %s210_s22 = sand.u32 1, %s1183_s20   ;;  %p1292_p4 = por %p150_p13, %p36_p8 }
  0x18   : > { %p1296_p6 = por %p156_p0, %p42_p10  ;;  %s945_s27 = sshll.u32 %s210_s22, 3 }
  0x19   : > { %s946_s28 = sshll.u32 %s1187_s21, 3  ;;  %s214_s7 = scalar_lea.vmem [#allocation2], %s945_s27 }
  0x1a   : > { %s218_s6 = scalar_lea.hbm %s1663_s0, %s946_s28  ;;  %s222_s8 = sshll.u32 %s214_s7, 4  ;;  %s223_s8 = int_to_ptr.vmem [resolvable:$true] %s222_s8 }
  0x1b   : > { %s220_s9 = sshll.u32 %s218_s6, 4  ;;  %p1306_p7 = pnand %p985_p2, %p1279_p11  ;;  %s221_s9 = int_to_ptr.hbm [resolvable:$true] %s220_s9 }
  0x1c   : > { %s211_s11 = scalar_lea.sflag [#allocation3], %s210_s22  ;;  %s1087_s13 = sshra.s32 %s221_s9, 4  ;;  %s1088_s13 = int_to_ptr.hbm [resolvable:$true] %s1087_s13 }
  0x1d   : > { %s1089_s14 = scalar_lea.hbm %s1088_s13, 8  ;;  %p1091_p9 = pneg %p1306_p7 }
  0x1e   : > { %p1090_p8 = scmp.ne.s32.totalorder %s1088_s13, %s1089_s14  ;;  %s1094_s29 = scalar_lea.hbm %s1663_s0, 16 }
  0x1f   : > { %p1095_p11 = scmp.lt.s32.totalorder %s1088_s13, %s1663_s0  ;;  %p1096_p0 = scmp.lt.s32.totalorder %s1094_s29, %s1089_s14 }
  0x20   : > { %p1092_p10 = pnand %p1091_p9, %p1090_p8 }
  0x21   : > { %p1097_p2 = por %p1096_p0, %p1095_p11 }
  0x22   : > { %p1093_p13 = pneg %p1092_p10 }
  0x24   : > { %p1098_p5 = pnand %p1097_p2, %p1093_p13 }
  0x26   : > { %1101 = shalt.err (!%p1098_p5)
}
  0x27   : > { %978 = dma.hbm_to_vmem [thread:$0]  (!%p1306_p7), %s221_s9, 128, %s223_s8, %s211_s11  }
  0x28   : > { %231 = sbr.rel (%p1252_p3) target bundleno = 367 (0x16f), region = 40  ;;  %s1323_s22 = sand.u32 (!%p1252_p3), 1, %s1179_s19  }
  0x29   : > { %s948_s6 = sshll.u32 (!%p1252_p3), %s1323_s22, 3  ;;  %s234_s7 = scalar_lea.sflag (!%p1252_p3), [#allocation3], %s1323_s22 }
  0x2a   : > { %s237_s13 = scalar_lea.vmem (!%p1252_p3), [#allocation2], %s948_s6 }
  0x2d   : > { %1162 = dma.done.wait (%p1285_p12), %s234_s7, 128  }
  0x2e   : > { %1164 = vsyncadd (%p1285_p12), %s234_s7, 4294967168 }
  0x2f   : > { %1166 = dma.done.wait (%p43_p1), [#allocation6], 2560  }
  0x30   : > { %1168 = vsyncadd (%p43_p1), [#allocation6], 4294964736  ;;  %vm284_vm0 = vcmask 261120   ;;  %v279_v0 = vld [vmem:[#allocation5 + $0x18] sm:$0xff]  ;;  %v278_v1 = vld [vmem:[#allocation5 + $0x10] sm:$0xff]  ;;  %s953_s10 = sshll.u32 %s1247_s25, 3 }
  0x31   : > { %v277_v2 = vld [vmem:[#allocation5 + $0x8] sm:$0xff]  ;;  %v1337_v3 = vand.u32 4294901760, %v279_v0  ;;  %v1339_v4 = vand.u32 4294901760, %v278_v1  ;;  %v276_v6 = vld [vmem:[#allocation5] sm:$0xff]  ;;  %v275_v7 = vld [vmem:[%s237_s13] sm:$0xff]  ;;  %s846_s27 = scalar_lea.hbm %s1668_s5, %s953_s10  ;;  %s274_s28 = scalar_lea.vmem [#allocation8], %s948_s6 }
  0x32   : > { %v1341_v5 = vand.u32 4294901760, %v277_v2  ;;  %v1343_v8 = vand.u32 4294901760, %v276_v6  ;;  %v286_v9 = vsel %vm284_vm0, %v275_v7, 0  ;;  %v488_v10 = vld [vmem:[#allocation7 + $0x78] sm:$0xff]  ;;  %v487_v11 = vld [vmem:[#allocation7 + $0x70] sm:$0xff]  ;;  %v486_v12 = vld [vmem:[#allocation7 + $0x68] sm:$0xff] }
  0x33   : > { %301 = vmatpush.msra.mxu0 %v1337_v3  ;;  %v1347_v13 = vsub.f32 %v279_v0, %v1337_v3  ;;  %v1349_v14 = vand.u32 4294901760, %v286_v9  ;;  %v1352_v15 = vsub.f32 %v278_v1, %v1339_v4  ;;  %v1360_v18 = vand.u32 4294901760, %v488_v10  ;;  %v485_v37 = vld [vmem:[#allocation7 + $0x60] sm:$0xff]  ;;  %v484_v38 = vld [vmem:[#allocation7 + $0x58] sm:$0xff]  ;;  %v483_v39 = vld [vmem:[#allocation7 + $0x50] sm:$0xff]  ;;  %s848_s29 = sshll.u32 %s274_s28, 4  ;;  %s849_s29 = int_to_ptr.vmem [resolvable:$true] %s848_s29 }
  0x34   : > { %v1355_v16 = vsub.f32 %v277_v2, %v1341_v5  ;;  %v1358_v17 = vsub.f32 %v276_v6, %v1343_v8  ;;  %v1362_v19 = vand.u32 4294901760, %v487_v11  ;;  %v1364_v20 = vand.u32 4294901760, %v486_v12  ;;  %v482_v43 = vld [vmem:[#allocation7 + $0x48] sm:$0xff]  ;;  %v481_v48 = vld [vmem:[#allocation7 + $0x40] sm:$0xff]  ;;  %v480_v53 = vld [vmem:[#allocation7 + $0x38] sm:$0xff]  ;;  %s850_s30 = sshll.u32 %s846_s27, 4  ;;  %s851_s30 = int_to_ptr.hbm [resolvable:$true] %s850_s30 }
  0x35   : > { %303 = vmatpush.msra.mxu0 %v1339_v4  ;;  %v331_v21 = vand.u32 4294901760, %v1347_v13  ;;  %v1369_v22 = vsub.f32 %v286_v9, %v1349_v14  ;;  %v337_v23 = vand.u32 4294901760, %v1352_v15  ;;  %v1375_v26 = vsub.f32 %v488_v10, %v1360_v18  ;;  %494 = vmatpush.msra.mxu2 %v1360_v18  ;;  %v479_v54 = vld [vmem:[#allocation7 + $0x30] sm:$0xff]  ;;  %v478_v63 = vld [vmem:[#allocation7 + $0x28] sm:$0xff]  ;;  %s836_s25 = scalar_lea.sflag [#allocation4], %s1323_s22  ;;  %s1131_s16 = sshra.s32 %s851_s30, 4  ;;  %s1132_s16 = int_to_ptr.hbm [resolvable:$true] %s1131_s16 }
  0x36   : > { %v343_v24 = vand.u32 4294901760, %v1355_v16  ;;  %v349_v25 = vand.u32 4294901760, %v1358_v17  ;;  %v1378_v27 = vsub.f32 %v487_v11, %v1362_v19  ;;  %v1381_v28 = vsub.f32 %v486_v12, %v1364_v20  ;;  %s1133_s7 = scalar_lea.hbm %s1132_s16, 8  ;;  %s1137_s6 = scalar_lea.hbm %s1668_s5, 16 }
  0x37   : > { %305 = vmatpush.msra.mxu0 %v1341_v5  ;;  %v332_v29 = vsub.f32 %v1347_v13, %v331_v21  ;;  %v310_v30 = vand.u32 4294901760, %v1369_v22  ;;  %v338_v31 = vsub.f32 %v1352_v15, %v337_v23  ;;  %v536_v34 = vand.u32 4294901760, %v1375_v26  ;;  %496 = vmatpush.msra.mxu2 %v1362_v19  ;;  %p1134_p1 = scmp.ne.s32.totalorder %s1132_s16, %s1133_s7  ;;  %p1138_p12 = scmp.lt.s32.totalorder %s1132_s16, %s1668_s5 }
  0x38   : > { %v344_v32 = vsub.f32 %v1355_v16, %v343_v24  ;;  %v350_v33 = vsub.f32 %v1358_v17, %v349_v25  ;;  %v542_v35 = vand.u32 4294901760, %v1378_v27  ;;  %v548_v36 = vand.u32 4294901760, %v1381_v28  ;;  %p1139_p7 = scmp.lt.s32.totalorder %s1137_s6, %s1133_s7 }
  0x39   : > { %307 = vmatpush.msra.mxu0 %v1343_v8  ;;  %v333_v40 = vand.u32 4294901760, %v332_v29  ;;  %v311_v41 = vsub.f32 %v1369_v22, %v310_v30  ;;  %v339_v42 = vand.u32 4294901760, %v338_v31  ;;  %v537_v45 = vsub.f32 %v1375_v26, %v536_v34  ;;  %498 = vmatpush.msra.mxu2 %v1364_v20  ;;  %p1135_p3 = pnand %p1134_p1, %p1292_p4 }
  0x3a   : > { %v345_v44 = vand.u32 4294901760, %v344_v32  ;;  %v543_v46 = vsub.f32 %v1378_v27, %v542_v35  ;;  %v549_v47 = vsub.f32 %v1381_v28, %v548_v36  ;;  %v1417_v50 = vand.u32 4294901760, %v485_v37  ;;  %p1140_p8 = por %p1139_p7, %p1138_p12 }
  0x3b   : > { %372 = vmatpush.msrb.mxu0 %v1347_v13  ;;  %334 = vmatpush.msra.mxu1 %v333_v40  ;;  %v312_v49 = vand.u32 4294901760, %v311_v41  ;;  %v1419_v51 = vand.u32 4294901760, %v484_v38  ;;  %v1421_v52 = vand.u32 4294901760, %v483_v39  ;;  %v351_v55 = vand.u32 4294901760, %v350_v33  ;;  %v475_v41 = vld [vmem:[#allocation7 + $0x10] sm:$0xff]  ;;  %p1136_p5 = pneg %p1135_p3 }
  0x3c   : > { %v538_v56 = vand.u32 4294901760, %v537_v45  ;;  %v544_v57 = vand.u32 4294901760, %v543_v46  ;;  %v1424_v58 = vand.u32 4294901760, %v482_v43  ;;  %v1427_v59 = vsub.f32 %v485_v37, %v1417_v50  ;;  %500 = vmatpush.msra.mxu2 %v1417_v50 }
  0x3d   : > { %375 = vmatpush.msrb.mxu0 %v1352_v15  ;;  %340 = vmatpush.msra.mxu1 %v339_v42  ;;  %v1430_v60 = vsub.f32 %v484_v38, %v1419_v51  ;;  %v1433_v61 = vsub.f32 %v483_v39, %v1421_v52  ;;  %v1435_v62 = vand.u32 4294901760, %v481_v48  ;;  %v550_v0 = vand.u32 4294901760, %v549_v47  ;;  %v476_v39 = vld [vmem:[#allocation7 + $0x18] sm:$0xff]  ;;  %p1141_p9 = pnand %p1140_p8, %p1136_p5 }
  0x3e   : > { %313 = vmatmul.f32.vlgmr.msra.gmra.mxu0 %v312_v49  ;;  %539 = vmatpush.msra.mxu3 %v538_v56  ;;  %v1439_v1 = vsub.f32 %v482_v43, %v1424_v58  ;;  %v1441_v2 = vand.u32 4294901760, %v480_v53  ;;  %v1443_v6 = vand.u32 4294901760, %v479_v54  ;;  %v554_v7 = vand.u32 4294901760, %v1427_v59 }
  0x3f   : > { %378 = vmatpush.msrb.mxu0 %v1355_v16  ;;  %346 = vmatpush.msra.mxu1 %v345_v44  ;;  %v560_v9 = vand.u32 4294901760, %v1430_v60  ;;  %v566_v10 = vand.u32 4294901760, %v1433_v61  ;;  %v1450_v11 = vsub.f32 %v481_v48, %v1435_v62  ;;  %v1457_v31 = vand.u32 4294901760, %v478_v63 }
  0x40   : > { %545 = vmatpush.msra.mxu3 %v544_v57  ;;  %v572_v12 = vand.u32 4294901760, %v1439_v1  ;;  %v1455_v29 = vsub.f32 %v480_v53, %v1441_v2  ;;  %v555_v32 = vsub.f32 %v1427_v59, %v554_v7  ;;  %v1473_v13 = vsub.f32 %v479_v54, %v1443_v6  ;;  %502 = vmatpush.msra.mxu2 %v1419_v51 }
  0x41   : > { %381 = vmatpush.msrb.mxu0 %v1358_v17  ;;  %352 = vmatpush.msra.mxu1 %v351_v55  ;;  %v561_v33 = vsub.f32 %v1430_v60, %v560_v9  ;;  %v567_v37 = vsub.f32 %v1433_v61, %v566_v10  ;;  %v578_v38 = vand.u32 4294901760, %v1450_v11  ;;  %v1484_v45 = vsub.f32 %v478_v63, %v1457_v31 }
  0x42   : > { %354 = vmatmul.f32.vlgmr.msra.gmra.mxu1 %v1349_v14  ;;  %551 = vmatpush.msra.mxu3 %v550_v0  ;;  %v556_v40 = vand.u32 4294901760, %v555_v32  ;;  %v573_v43 = vsub.f32 %v1439_v1, %v572_v12  ;;  %v584_v44 = vand.u32 4294901760, %v1455_v29  ;;  %v590_v48 = vand.u32 4294901760, %v1473_v13 }
  0x43   : > { %430 = vmatpush.msra.mxu0 %v331_v21  ;;  %v477_v21 = vld [vmem:[#allocation7 + $0x20] sm:$0xff]  ;;  %401 = vmatpush.msrb.mxu1 %v1337_v3  ;;  %v562_v42 = vand.u32 4294901760, %v561_v33  ;;  %v568_v46 = vand.u32 4294901760, %v567_v37  ;;  %v579_v47 = vsub.f32 %v1450_v11, %v578_v38  ;;  %v1498_v49 = vand.u32 4294901760, %v475_v41 }
  0x44   : > { %v1488_v15 = vand.u32 4294901760, %v477_v21  ;;  %557 = vmatpush.msra.mxu3 %v556_v40  ;;  %504 = vmatpush.msra.mxu2 %v1421_v52  ;;  %v574_v16 = vand.u32 4294901760, %v573_v43  ;;  %v596_v54 = vand.u32 4294901760, %v1484_v45  ;;  %v473_v40 = vld [vmem:[#allocation7] sm:$0xff] }
  0x45   : > { %434 = vmatpush.msra.mxu0 %v337_v23  ;;  %403 = vmatpush.msrb.mxu1 %v1339_v4  ;;  %v1490_v23 = vand.u32 4294901760, %v476_v39  ;;  %v580_v17 = vand.u32 4294901760, %v579_v47  ;;  %v1523_v57 = vsub.f32 %v475_v41, %v1498_v49 }
  0x46   : > { %384 = vmatmul.f32.vlgmr.msrb.gmra.mxu0 %v1369_v22  ;;  %v1503_v53 = vsub.f32 %v477_v21, %v1488_v15  ;;  %563 = vmatpush.msra.mxu3 %v562_v42  ;;  %v597_v22 = vsub.f32 %v1484_v45, %v596_v54  ;;  %v523_v42 = vand.u32 4294901760, %v473_v40 }
  0x47   : > { %438 = vmatpush.msra.mxu0 %v343_v24  ;;  %405 = vmatpush.msrb.mxu1 %v1341_v5  ;;  %v585_v24 = vsub.f32 %v1455_v29, %v584_v44  ;;  %v1512_v55 = vsub.f32 %v476_v39, %v1490_v23  ;;  %v614_v32 = vand.u32 4294901760, %v1523_v57 }
  0x48   : > { %506 = vmatpush.msra.mxu2 %v1424_v58  ;;  %569 = vmatpush.msra.mxu3 %v568_v46  ;;  %v602_v56 = vand.u32 4294901760, %v1503_v53  ;;  %v598_v33 = vand.u32 4294901760, %v597_v22  ;;  %v625_v46 = vsub.f32 %v473_v40, %v523_v42 }
  0x49   : > { %442 = vmatpush.msra.mxu0 %v349_v25  ;;  %407 = vmatpush.msrb.mxu1 %v1343_v8  ;;  %v591_v25 = vsub.f32 %v1473_v13, %v590_v48  ;;  %v586_v63 = vand.u32 4294901760, %v585_v24 }
  0x4a   : > { %411 = vmatmul.f32.vlgmr.msrb.gmra.mxu1 %v310_v30  ;;  %508 = vmatpush.msra.mxu2 %v1435_v62  ;;  %v608_v30 = vand.u32 4294901760, %v1512_v55 }
  0x4b   : > { %461 = vmatpush.msra.mxu1 %v1337_v3  ;;  %575 = vmatpush.msra.mxu3 %v574_v16  ;;  %v592_v0 = vand.u32 4294901760, %v591_v25  ;;  %v603_v3 = vsub.f32 %v1503_v53, %v602_v56  ;;  %v626_v16 = vand.u32 4294901760, %v625_v46 }
  0x4c   : > { %637 = vmatpush.msrb.mxu0 %v1375_v26  ;;  %510 = vmatpush.msra.mxu2 %v1441_v2 }
  0x4d   : > { %463 = vmatpush.msra.mxu1 %v1339_v4  ;;  %581 = vmatpush.msra.mxu3 %v580_v17  ;;  %v609_v4 = vsub.f32 %v1512_v55, %v608_v30  ;;  %v604_v37 = vand.u32 4294901760, %v603_v3  ;;  %v627_v17 = vsub.f32 %v625_v46, %v626_v16 }
  0x4e   : > { %444 = vmatmul.f32.vlgmr.msra.gmra.mxu0 %v1349_v14  ;;  %512 = vmatpush.msra.mxu2 %v1443_v6 }
  0x4f   : > { %465 = vmatpush.msra.mxu1 %v1341_v5  ;;  %640 = vmatpush.msrb.mxu0 %v1378_v27  ;;  %v615_v5 = vsub.f32 %v1523_v57, %v614_v32  ;;  %v610_v21 = vand.u32 4294901760, %v609_v4  ;;  %v628_v25 = vand.u32 4294901760, %v627_v17 }
  0x50   : > { %587 = vmatpush.msra.mxu3 %v586_v63  ;;  %514 = vmatpush.msra.mxu2 %v1457_v31 }
  0x51   : > { %467 = vmatpush.msra.mxu1 %v1343_v8  ;;  %643 = vmatpush.msrb.mxu0 %v1381_v28  ;;  %v616_v8 = vand.u32 4294901760, %v615_v5 }
  0x52   : > { %469 = vmatmul.f32.vlgmr.msra.gmra.mxu1 %v1349_v14  ;;  %593 = vmatpush.msra.mxu3 %v592_v0  ;;  %v474_v14 = vld [vmem:[#allocation7 + $0x8] sm:$0xff] }
  0x53   : > { %690 = vmatpush.msrb.mxu1 %v1360_v18  ;;  %646 = vmatpush.msrb.mxu0 %v1427_v59  ;;  %v521_v39 = vand.u32 4294901760, %v474_v14 }
  0x54   : > { %599 = vmatpush.msra.mxu3 %v598_v33  ;;  %516 = vmatpush.msra.mxu2 %v1488_v15 }
  0x55   : > { %692 = vmatpush.msrb.mxu1 %v1362_v19  ;;  %649 = vmatpush.msrb.mxu0 %v1430_v60  ;;  %v619_v41 = vsub.f32 %v474_v14, %v521_v39 }
  0x56   : > { %605 = vmatpush.msra.mxu3 %v604_v37  ;;  %518 = vmatpush.msra.mxu2 %v1490_v23 }
  0x57   : > { %694 = vmatpush.msrb.mxu1 %v1364_v20  ;;  %652 = vmatpush.msrb.mxu0 %v1433_v61  ;;  %v620_v43 = vand.u32 4294901760, %v619_v41 }
  0x58   : > { %611 = vmatpush.msra.mxu3 %v610_v21  ;;  %520 = vmatpush.msra.mxu2 %v1498_v49 }
  0x59   : > { %696 = vmatpush.msrb.mxu1 %v1417_v50  ;;  %655 = vmatpush.msrb.mxu0 %v1439_v1  ;;  %v621_v47 = vsub.f32 %v619_v41, %v620_v43 }
  0x5a   : > { %617 = vmatpush.msra.mxu3 %v616_v8  ;;  %522 = vmatpush.msra.mxu2 %v521_v39 }
  0x5b   : > { %698 = vmatpush.msrb.mxu1 %v1419_v51  ;;  %658 = vmatpush.msrb.mxu0 %v1450_v11  ;;  %v622_v24 = vand.u32 4294901760, %v621_v47 }
  0x5c   : > { %524 = vmatpush.msra.mxu2 %v523_v42 }
  0x5d   : > { %700 = vmatpush.msrb.mxu1 %v1421_v52  ;;  %661 = vmatpush.msrb.mxu0 %v1455_v29 }
  0x5e   : > { %731 = vmatpush.msrb.mxu2 %v536_v34  ;;  %623 = vmatpush.msra.mxu3 %v622_v24 }
  0x5f   : > { %702 = vmatpush.msrb.mxu1 %v1424_v58  ;;  %664 = vmatpush.msrb.mxu0 %v1473_v13 }
  0x60   : > { %735 = vmatpush.msrb.mxu2 %v542_v35  ;;  %629 = vmatpush.msra.mxu3 %v628_v25 }
  0x61   : > { %704 = vmatpush.msrb.mxu1 %v1435_v62  ;;  %667 = vmatpush.msrb.mxu0 %v1484_v45 }
  0x62   : > { %739 = vmatpush.msrb.mxu2 %v548_v36  ;;  %798 = vmatpush.msrb.mxu3 %v1360_v18 }
  0x63   : > { %706 = vmatpush.msrb.mxu1 %v1441_v2  ;;  %670 = vmatpush.msrb.mxu0 %v1503_v53 }
  0x64   : > { %743 = vmatpush.msrb.mxu2 %v554_v7  ;;  %800 = vmatpush.msrb.mxu3 %v1362_v19  ;;  %v1025_v19 = vld [vmem:[%s1665_s2] ss:$0 sm:$0xff] }
  0x65   : > { %708 = vmatpush.msrb.mxu1 %v1443_v6  ;;  %673 = vmatpush.msrb.mxu0 %v1512_v55 }
  0x66   : > { %747 = vmatpush.msrb.mxu2 %v560_v9  ;;  %802 = vmatpush.msrb.mxu3 %v1364_v20 }
  0x67   : > { %710 = vmatpush.msrb.mxu1 %v1457_v31  ;;  %676 = vmatpush.msrb.mxu0 %v1523_v57 }
  0x68   : > { %751 = vmatpush.msrb.mxu2 %v566_v10  ;;  %804 = vmatpush.msrb.mxu3 %v1417_v50 }
  0x69   : > { %712 = vmatpush.msrb.mxu1 %v1488_v15  ;;  %679 = vmatpush.msrb.mxu0 %v619_v41 }
  0x6a   : > { %755 = vmatpush.msrb.mxu2 %v572_v12  ;;  %806 = vmatpush.msrb.mxu3 %v1419_v51 }
  0x6b   : > { %714 = vmatpush.msrb.mxu1 %v1490_v23  ;;  %682 = vmatpush.msrb.mxu0 %v625_v46 }
  0x6c   : > { %759 = vmatpush.msrb.mxu2 %v578_v38  ;;  %808 = vmatpush.msrb.mxu3 %v1421_v52 }
  0x6d   : > { %716 = vmatpush.msrb.mxu1 %v1498_v49 }
  0x6e   : > { %763 = vmatpush.msrb.mxu2 %v584_v44  ;;  %810 = vmatpush.msrb.mxu3 %v1424_v58 }
  0x6f   : > { %718 = vmatpush.msrb.mxu1 %v521_v39 }
  0x70   : > { %767 = vmatpush.msrb.mxu2 %v590_v48  ;;  %812 = vmatpush.msrb.mxu3 %v1435_v62 }
  0x71   : > { %720 = vmatpush.msrb.mxu1 %v523_v42 }
  0x72   : > { %771 = vmatpush.msrb.mxu2 %v596_v54  ;;  %814 = vmatpush.msrb.mxu3 %v1441_v2  ;;  %v1026_v2 = vld [vmem:[%s1667_s4] ss:$0 sm:$0xff] }
  0x74   : > { %775 = vmatpush.msrb.mxu2 %v602_v56  ;;  %816 = vmatpush.msrb.mxu3 %v1443_v6 }
  0x76   : > { %779 = vmatpush.msrb.mxu2 %v608_v30  ;;  %818 = vmatpush.msrb.mxu3 %v1457_v31 }
  0x78   : > { %783 = vmatpush.msrb.mxu2 %v614_v32  ;;  %820 = vmatpush.msrb.mxu3 %v1488_v15 }
  0x7a   : > { %787 = vmatpush.msrb.mxu2 %v620_v43  ;;  %822 = vmatpush.msrb.mxu3 %v1490_v23 }
  0x7c   : > { %791 = vmatpush.msrb.mxu2 %v626_v16  ;;  %824 = vmatpush.msrb.mxu3 %v1498_v49 }
  0x7e   : > { %826 = vmatpush.msrb.mxu3 %v521_v39 }
  0x80   : > { %828 = vmatpush.msrb.mxu3 %v523_v42 }
  0xbb   : > { %v314_v18 = vpop.f32.mrf.mxu0 }
  0xbc   : > { %v315_v26 = vadd.f32 %v1025_v19, %v314_v18 }
  0xbf   : > { %v355_v20 = vpop.f32.mrf.mxu1 }
  0xc0   : > { %v356_v28 = vadd.f32 %v355_v20, %v315_v26 }
  0xc3   : > { %v385_v27 = vpop.f32.mrf.mxu0 }
  0xc4   : > { %v386_v35 = vadd.f32 %v385_v27, %v356_v28 }
  0xc7   : > { %v412_v34 = vpop.f32.mrf.mxu1 }
  0xc8   : > { %v413_v36 = vadd.f32 %v412_v34, %v386_v35 }
  0xcb   : > { %v445_v50 = vpop.f32.mrf.mxu0 }
  0xcc   : > { %v446_v51 = vadd.f32 %v445_v50, %v413_v36 }
  0xcf   : > { %v470_v52 = vpop.f32.mrf.mxu1 }
  0xd0   : > { %v471_v58 = vadd.f32 %v470_v52, %v446_v51 }
  0xd2   : > { %v525_v59 = vand.u32 4294901760, %v471_v58 }
  0xd4   : > { %v526_v60 = vsub.f32 %v471_v58, %v525_v59  ;;  %631 = vmatmul.f32.vlgmr.msra.gmra.mxu3 %v525_v59 }
  0xd6   : > { %v527_v61 = vand.u32 4294901760, %v526_v60  ;;  %685 = vmatmul.f32.vlgmr.msrb.gmra.mxu0 %v526_v60 }
  0xd8   : > { %724 = vmatmul.f32.vlgmr.msrb.gmra.mxu1 %v527_v61  ;;  %v528_v62 = vsub.f32 %v526_v60, %v527_v61 }
  0xda   : > { %v529_v1 = vand.u32 4294901760, %v528_v62 }
  0xdc   : > { %530 = vmatmul.f32.vlgmr.msra.gmra.mxu2 %v529_v1  ;;  %830 = vmatmul.f32.vlgmr.msrb.gmra.mxu3 %v525_v59 }
  0xe4   : > { %793 = vmatmul.f32.vlgmr.msrb.gmra.mxu2 %v525_v59 }
 0x153   : > { %v686_v11 = vpop.f32.mrf.mxu0 }
 0x155   : > { %v725_v29 = vpop.f32.mrf.mxu1 }
 0x157   : > { %v632_v6 = vpop.f32.mrf.mxu3 }
 0x15f   : > { %v531_v7 = vpop.f32.mrf.mxu2  ;;  %v831_v44 = vpop.f32.mrf.mxu3 }
 0x160   : > { %v532_v9 = vadd.f32 %v1026_v2, %v531_v7 }
 0x162   : > { %v633_v10 = vadd.f32 %v632_v6, %v532_v9 }
 0x164   : > { %v687_v12 = vadd.f32 %v686_v11, %v633_v10 }
 0x166   : > { %v726_v31 = vadd.f32 %v725_v29, %v687_v12 }
 0x167   : > { %v794_v38 = vpop.f32.mrf.mxu2 }
 0x168   : > { %v795_v13 = vadd.f32 %v794_v38, %v726_v31 }
 0x16a   : > { %v832_v45 = vadd.f32 %v831_v44, %v795_v13 }
 0x16c   : > { %834 = vst [vmem:[%s274_s28] sm:$0xff] %v832_v45 }
 0x16d   : > { %1144 = shalt.err (!%p1141_p9)
}
 0x16e   : > { %966 = dma.vmem_to_hbm [thread:$0]  (%p1292_p4), %s849_s29, 128, %s851_s30, %s836_s25  }
 0x16f PF: > { %s862_s22 = sand.u32 1, %s1175_s18   ;;  %p1675_p10 = scmp.ge.s32.totalorder %s1187_s21, 2 }
 0x170   : > { %s863_s9 = scalar_lea.sflag [#allocation4], %s862_s22 }
 0x171   : > { %p980_p13 = pnand %p1675_p10, %p1296_p6 }
 0x173   : > { %p981_p11 = pneg %p980_p13 }
 0x175   : > { %1170 = dma.done.wait (%p981_p11), %s863_s9, 128  }
 0x176   : > { %1172 = vsyncadd (%p981_p11), %s863_s9, 4294967168  ;;  %p19_p0 = scmp.ge.s32.totalorder %s1266_s12, 4   ;;  %s1676_s18 = smov %s1179_s19 }
 0x177   : > { %s1677_s19 = smov %s1183_s20  ;;  %s1678_s20 = smov %s1277_s15 }
 0x178   : > { %s1679_s21 = smov %s1266_s12  ;;  %21 = sbr.rel (!%p19_p0) target bundleno = 6 (0x6), region = 93 }
 0x17d   :  { %869 = vsyncpa [#allocation3], 1 }
 0x17e   :  { %871 = vsyncpa [#allocation3 + $0x1], 1 }
 0x17f   :  { %872 = vsyncpa [#allocation6], 1 }
 0x180   :  { %873 = vsyncpa [#allocation4], 1 }
 0x181   :  { %875 = vsyncpa [#allocation4 + $0x1], 1 }

</bundles_post_ra>
